<compile_context>
chip_gen: v7x
topology: tpu7x:2x2x1
jax: 0.10.0
libtpu: 0.0.40
codegen_flags: <defaults>
</compile_context>

<pallas_src>
import functools

import jax
import jax.numpy as jnp
from jax.experimental import pallas as pl
from jax.experimental.pallas import tpu as pltpu

_BN_EPS = 1e-5
_EXT = 4  # Bottleneck.extention
_VMEM_LIMIT = 32 * 1024 * 1024  # safe on v5e/v6e/v7x scoped-VMEM budgets


# ----------------------------- small helpers -----------------------------

def _round_up(x, m):
    return (x + m - 1) // m * m


def _pad2d(x, mp, np_):
    m, n = x.shape
    if mp == m and np_ == n:
        return x
    return jnp.pad(x, ((0, mp - m), (0, np_ - n)))


def _pick_tile(dim, candidates):
    """Largest candidate tile that divides `dim` (dim is a multiple of 128)."""
    for c in candidates:
        if dim % c == 0:
            return c
    return candidates[-1]


# ----------------------------- Pallas kernels ----------------------------

def _matmul_bn_kernel(a_ref, b_ref, y_ref, s_ref, q_ref, acc_ref):
    """Tiled matmul with fused per-channel sum / sum-of-squares accumulation.

    Grid = (j over Cout blocks [parallel], i over M blocks, k over K blocks).
    """
    i = pl.program_id(1)
    k = pl.program_id(2)
    nk = pl.num_programs(2)

    @pl.when(k == 0)
    def _():
        acc_ref[...] = jnp.zeros_like(acc_ref)

    @pl.when((i == 0) & (k == 0))
    def _():
        s_ref[...] = jnp.zeros_like(s_ref)
        q_ref[...] = jnp.zeros_like(q_ref)

    acc_ref[...] += jnp.dot(a_ref[...], b_ref[...],
                            preferred_element_type=jnp.float32)

    @pl.when(k == nk - 1)
    def _():
        y = acc_ref[...]
        y_ref[...] = y.astype(y_ref.dtype)
        # Padded A rows are exactly zero, so they contribute 0 to both sums.
        s_ref[...] += jnp.sum(y, axis=0, keepdims=True)
        q_ref[...] += jnp.sum(y * y, axis=0, keepdims=True)


@functools.partial(jax.jit, static_argnames=("tm", "tn", "tk"))
def _matmul_bn_p(a, b, *, tm, tn, tk):
    mp, kp = a.shape
    _, cp = b.shape
    return pl.pallas_call(
        _matmul_bn_kernel,
        out_shape=(jax.ShapeDtypeStruct((mp, cp), jnp.float32),
                   jax.ShapeDtypeStruct((1, cp), jnp.float32),
                   jax.ShapeDtypeStruct((1, cp), jnp.float32)),
        grid_spec=pltpu.PrefetchScalarGridSpec(
            num_scalar_prefetch=0,
            grid=(cp // tn, mp // tm, kp // tk),
            in_specs=[pl.BlockSpec((tm, tk), lambda j, i, k: (i, k)),
                      pl.BlockSpec((tk, tn), lambda j, i, k: (k, j))],
            out_specs=(pl.BlockSpec((tm, tn), lambda j, i, k: (i, j)),
                       pl.BlockSpec((1, tn), lambda j, i, k: (0, j)),
                       pl.BlockSpec((1, tn), lambda j, i, k: (0, j))),
            scratch_shapes=[pltpu.VMEM((tm, tn), jnp.float32)]),
        compiler_params=pltpu.CompilerParams(
            dimension_semantics=("parallel", "arbitrary", "arbitrary"),
            vmem_limit_bytes=_VMEM_LIMIT),
    )(a, b)


def _make_affine_kernel(relu, has_res):
    def kernel(*refs):
        if has_res:
            y_ref, sc_ref, sh_ref, r_ref, o_ref = refs
        else:
            y_ref, sc_ref, sh_ref, o_ref = refs
            r_ref = None
        o = y_ref[...] * sc_ref[...] + sh_ref[...]
        if has_res:
            o = o + r_ref[...].astype(jnp.float32)
        if relu:
            o = jnp.maximum(o, 0.0)
        o_ref[...] = o.astype(o_ref.dtype)
    return kernel


_AFFINE_KERNELS = {(r, h): _make_affine_kernel(r, h)
                   for r in (False, True) for h in (False, True)}


@functools.partial(jax.jit, static_argnames=("tm", "tn", "relu", "has_res"))
def _affine_p(y, scale, shift, res, *, tm, tn, relu, has_res):
    mp, cp = y.shape
    kernel = _AFFINE_KERNELS[(relu, has_res)]
    row_spec = pl.BlockSpec((tm, tn), lambda i, j: (i, j))
    vec_spec = pl.BlockSpec((1, tn), lambda i, j: (0, j))
    in_specs = [row_spec, vec_spec, vec_spec]
    args = [y, scale, shift]
    if has_res:
        in_specs.append(row_spec)
        args.append(res)
    return pl.pallas_call(
        kernel,
        out_shape=jax.ShapeDtypeStruct((mp, cp), jnp.bfloat16),
        grid_spec=pltpu.PrefetchScalarGridSpec(
            num_scalar_prefetch=0, grid=(mp // tm, cp // tn),
            in_specs=in_specs, out_specs=row_spec),
        compiler_params=pltpu.CompilerParams(
            dimension_semantics=("parallel", "parallel"),
            vmem_limit_bytes=_VMEM_LIMIT),
    )(*args)


def _maxpool_kernel(*refs):
    o_ref = refs[-1]
    m = refs[0][...].astype(jnp.float32)
    for r in refs[1:-1]:
        m = jnp.maximum(m, r[...].astype(jnp.float32))
    o_ref[...] = m.astype(o_ref.dtype)


@functools.partial(jax.jit, static_argnames=("tm",))
def _maxpool_p(cols, *, tm):
    mp, cp = cols[0].shape
    row_spec = pl.BlockSpec((tm, cp), lambda i: (i, 0))
    return pl.pallas_call(
        _maxpool_kernel,
        out_shape=jax.ShapeDtypeStruct((mp, cp), jnp.bfloat16),
        grid_spec=pltpu.PrefetchScalarGridSpec(
            num_scalar_prefetch=0, grid=(mp // tm,),
            in_specs=[row_spec] * len(cols),
            out_specs=row_spec),
        compiler_params=pltpu.CompilerParams(
            dimension_semantics=("parallel",),
            vmem_limit_bytes=_VMEM_LIMIT),
    )(*cols)


# ----------------------------- JAX glue layers ---------------------------

def _im2col(x, kh, kw, stride, pad, pad_value=0.0):
    # TODO(synk): 3x3 convs still materialize the im2col patch matrix in HBM;
    # a shifted-window reduction grid (taps on the k axis) would cut ~8x of
    # the activation read traffic for the middle conv of every block.
    n, h, w, c = x.shape
    xp = jnp.pad(x, ((0, 0), (pad, pad), (pad, pad), (0, 0)),
                 constant_values=pad_value)
    ho = (h + 2 * pad - kh) // stride + 1
    wo = (w + 2 * pad - kw) // stride + 1
    cols = []
    for i in range(kh):
        for j in range(kw):
            cols.append(xp[:, i:i + stride * ho:stride,
                           j:j + stride * wo:stride, :])
    patches = jnp.concatenate(cols, axis=-1).reshape(n * ho * wo, kh * kw * c)
    return patches, (n, ho, wo)


def conv_bn(x, w, gamma, beta, *, stride, pad, relu, residual=None):
    """Conv2d(bias=False) -> BatchNorm2d(train mode) [-> +residual] [-> ReLU]."""
    kh, kw, cin, cout = w.shape
    patches, (n, ho, wo) = _im2col(x.astype(jnp.bfloat16), kh, kw, stride, pad)
    m, k = patches.shape
    mp = _round_up(m, 128)
    kp = _round_up(k, 128)
    cp = _round_up(cout, 128)
    tm = _pick_tile(mp, (512, 256, 128))
    tn = _pick_tile(cp, (256, 128))
    tk = _pick_tile(kp, (512, 256, 128))

    a = _pad2d(patches, mp, kp)                                   # bf16
    b = _pad2d(w.reshape(kh * kw * cin, cout).astype(jnp.bfloat16), kp, cp)

    # Conv as MXU matmul with fused per-channel batch statistics.
    y, s, q = _matmul_bn_p(a, b, tm=tm, tn=tn, tk=tk)
    mean = s[0] / m
    var = jnp.maximum(q[0] / m - mean * mean, 0.0)  # biased variance, clamped
    g = jnp.pad(gamma, (0, cp - cout))
    bb = jnp.pad(beta, (0, cp - cout))
    scale = (g * jax.lax.rsqrt(var + _BN_EPS)).reshape(1, cp)
    shift = (bb - mean * scale[0]).reshape(1, cp)

    tn_a = _pick_tile(cp, (512, 256, 128))
    if residual is not None:
        r = _pad2d(residual.reshape(m, cout).astype(jnp.bfloat16), mp, cp)
        out = _affine_p(y, scale, shift, r, tm=tm, tn=tn_a,
                        relu=relu, has_res=True)
    else:
        out = _affine_p(y, scale, shift, None, tm=tm, tn=tn_a,
                        relu=relu, has_res=False)
    return out[:m, :cout].reshape(n, ho, wo, cout)


def maxpool2d(x, *, ksize=3, stride=2, pad=1):
    # TODO(synk): the 9 shifted taps are still materialized in HBM; a direct
    # windowed kernel on the padded NHWC tensor would cut this op's traffic.
    n, h, w, c = x.shape
    xp = jnp.pad(x, ((0, 0), (pad, pad), (pad, pad), (0, 0)),
                 constant_values=-jnp.inf)
    ho = (h + 2 * pad - ksize) // stride + 1
    wo = (w + 2 * pad - ksize) // stride + 1
    m = n * ho * wo
    mp = _round_up(m, 128)
    cp = _round_up(c, 128)
    cols = []
    for i in range(ksize):
        for j in range(ksize):
            sl = xp[:, i:i + stride * ho:stride, j:j + stride * wo:stride, :]
            cols.append(_pad2d(sl.reshape(m, c), mp, cp))
    tm = _pick_tile(mp, (512, 256, 128))
    out = _maxpool_p(tuple(cols), tm=tm)
    return out[:m, :c].reshape(n, ho, wo, c)


def bottleneck_forward(x, p, stride):
    y = conv_bn(x, p["w1"], p["g1"], p["b1"], stride=stride, pad=0, relu=True)
    y = conv_bn(y, p["w2"], p["g2"], p["b2"], stride=1, pad=1, relu=True)
    if "wd" in p:
        res = conv_bn(x, p["wd"], p["gd"], p["bd"], stride=stride, pad=0, relu=False)
    else:
        res = x
    return conv_bn(y, p["w3"], p["g3"], p["b3"], stride=1, pad=0,
                   relu=True, residual=res)


def resnet50_forward(x_nchw, params):
    x = jnp.transpose(x_nchw, (0, 2, 3, 1)).astype(jnp.bfloat16)  # NCHW -> NHWC
    st = params["stem"]
    x = conv_bn(x, st["w"], st["g"], st["b"], stride=2, pad=3, relu=True)
    x = maxpool2d(x, ksize=3, stride=2, pad=1)
    for stage, stride in zip(params["stages"], (1, 2, 2, 2)):
        for bi, bp in enumerate(stage):
            # TODO(synk): the reference make_stage passes `stride` to blocks >0 too,
            # which breaks the residual add for a standard Bottleneck; we use the
            # standard ResNet50 convention (stride only on a stage's first block).
            x = bottleneck_forward(x, bp, stride if bi == 0 else 1)
    return jnp.transpose(x, (0, 3, 1, 2)).astype(jnp.float32)      # back to NCHW


# ----------------------------- parameter init ----------------------------

def _conv_w(key, kh, kw, cin, cout):
    std = (2.0 / (kh * kw * cin)) ** 0.5
    return jax.random.normal(key, (kh, kw, cin, cout), jnp.float32) * std


def init_params(key, layers=(3, 4, 6, 3)):
    ctr = [0]

    def nk():
        ctr[0] += 1
        return jax.random.fold_in(key, ctr[0])

    params = {"stem": {"w": _conv_w(nk(), 7, 7, 3, 64),
                       "g": jnp.ones((64,), jnp.float32),
                       "b": jnp.zeros((64,), jnp.float32)},
              "stages": []}
    in_ch = 64
    for si, (cmid, nblk) in enumerate(zip((64, 128, 256, 512), layers)):
        stride = 1 if si == 0 else 2
        stage = []
        for bi in range(nblk):
            cin = in_ch if bi == 0 else cmid * _EXT
            p = {"w1": _conv_w(nk(), 1, 1, cin, cmid),
                 "g1": jnp.ones((cmid,), jnp.float32),
                 "b1": jnp.zeros((cmid,), jnp.float32),
                 "w2": _conv_w(nk(), 3, 3, cmid, cmid),
                 "g2": jnp.ones((cmid,), jnp.float32),
                 "b2": jnp.zeros((cmid,), jnp.float32),
                 "w3": _conv_w(nk(), 1, 1, cmid, cmid * _EXT),
                 "g3": jnp.ones((cmid * _EXT,), jnp.float32),
                 "b3": jnp.zeros((cmid * _EXT,), jnp.float32)}
            if bi == 0 and (stride != 1 or cin != cmid * _EXT):
                p["wd"] = _conv_w(nk(), 1, 1, cin, cmid * _EXT)
                p["gd"] = jnp.ones((cmid * _EXT,), jnp.float32)
                p["bd"] = jnp.zeros((cmid * _EXT,), jnp.float32)
            stage.append(p)
        params["stages"].append(stage)
        in_ch = cmid * _EXT
    return params


# --------------------------------- main -----------------------------------

if __name__ == "__main__":
    key = jax.random.PRNGKey(0)
    params = init_params(jax.random.fold_in(key, 1), layers=(3, 4, 6, 3))
    x = jax.random.normal(jax.random.fold_in(key, 2), (2, 3, 32, 32), jnp.float32)

    out = resnet50_forward(x, params)
    out = jax.block_until_ready(out)

    assert out.shape == (2, 2048, 1, 1), out.shape
    assert bool(jnp.all(jnp.isfinite(out))), "non-finite output"
    print("KERNEL_OK")
</pallas_src>

<mosaic_0001>
module attributes {stable_mosaic.version = 11 : i64} {
  func.func @_matmul_bn_kernel(%arg0: i32, %arg1: i32, %arg2: i32, %arg3: memref<512x256xbf16, #tpu.memory_space<vmem>>, %arg4: memref<256x128xbf16, #tpu.memory_space<vmem>>, %arg5: memref<512x128xf32, #tpu.memory_space<vmem>>, %arg6: memref<1x128xf32, #tpu.memory_space<vmem>>, %arg7: memref<1x128xf32, #tpu.memory_space<vmem>>, %arg8: memref<512x128xf32, #tpu.memory_space<vmem>>) attributes {dimension_semantics = [#tpu.dimension_semantics<parallel>, #tpu.dimension_semantics<arbitrary>, #tpu.dimension_semantics<arbitrary>], iteration_bounds = array<i64: 1, 1, 1>, scalar_prefetch = 0 : i64, scratch_operands = 1 : i64, tpu.core_type = #tpu.core_type<tc>, window_params = [{transform_indices = @transform_0, window_bounds = array<i64: 512, 256>}, {transform_indices = @transform_1, window_bounds = array<i64: 256, 128>}, {transform_indices = @transform_2, window_bounds = array<i64: 512, 128>}, {transform_indices = @transform_3, window_bounds = array<i64: 1, 128>}, {transform_indices = @transform_4, window_bounds = array<i64: 1, 128>}]} {
    %c0_i32 = arith.constant 0 : i32
    %0 = arith.cmpi eq, %arg2, %c0_i32 : i32
    %1 = arith.extui %0 : i1 to i32
    %c0_i32_0 = arith.constant 0 : i32
    %2 = arith.cmpi ne, %1, %c0_i32_0 : i32
    scf.if %2 {
      %cst_13 = arith.constant 0.000000e+00 : f32
      %17 = vector.broadcast %cst_13 : f32 to vector<512x128xf32>
      %c0_14 = arith.constant 0 : index
      %c0_15 = arith.constant 0 : index
      %18 = vector.load %arg8[%c0_14, %c0_15] : memref<512x128xf32, #tpu.memory_space<vmem>>, vector<512x128xf32>
      tpu.vector_store %arg8[%c0_14, %c0_15], %17 {strides = array<i32>} : memref<512x128xf32, #tpu.memory_space<vmem>>, vector<512x128xf32>,
    } else {
    }
    %c0_i32_1 = arith.constant 0 : i32
    %3 = arith.cmpi eq, %arg1, %c0_i32_1 : i32
    %c0_i32_2 = arith.constant 0 : i32
    %4 = arith.cmpi eq, %arg2, %c0_i32_2 : i32
    %5 = arith.andi %3, %4 : i1
    %6 = arith.extui %5 : i1 to i32
    %c0_i32_3 = arith.constant 0 : i32
    %7 = arith.cmpi ne, %6, %c0_i32_3 : i32
    scf.if %7 {
      %cst_13 = arith.constant 0.000000e+00 : f32
      %17 = vector.broadcast %cst_13 : f32 to vector<1x128xf32>
      %c0_14 = arith.constant 0 : index
      %c0_15 = arith.constant 0 : index
      %18 = vector.load %arg6[%c0_14, %c0_15] : memref<1x128xf32, #tpu.memory_space<vmem>>, vector<1x128xf32>
      tpu.vector_store %arg6[%c0_14, %c0_15], %17 {strides = array<i32>} : memref<1x128xf32, #tpu.memory_space<vmem>>, vector<1x128xf32>,
      %cst_16 = arith.constant 0.000000e+00 : f32
      %19 = vector.broadcast %cst_16 : f32 to vector<1x128xf32>
      %c0_17 = arith.constant 0 : index
      %c0_18 = arith.constant 0 : index
      %20 = vector.load %arg7[%c0_17, %c0_18] : memref<1x128xf32, #tpu.memory_space<vmem>>, vector<1x128xf32>
      tpu.vector_store %arg7[%c0_17, %c0_18], %19 {strides = array<i32>} : memref<1x128xf32, #tpu.memory_space<vmem>>, vector<1x128xf32>,
    } else {
    }
    %c0 = arith.constant 0 : index
    %c0_4 = arith.constant 0 : index
    %8 = vector.load %arg8[%c0, %c0_4] : memref<512x128xf32, #tpu.memory_space<vmem>>, vector<512x128xf32>
    %c0_5 = arith.constant 0 : index
    %c0_6 = arith.constant 0 : index
    %9 = vector.load %arg3[%c0_5, %c0_6] : memref<512x256xbf16, #tpu.memory_space<vmem>>, vector<512x256xbf16>
    %c0_7 = arith.constant 0 : index
    %c0_8 = arith.constant 0 : index
    %10 = vector.load %arg4[%c0_7, %c0_8] : memref<256x128xbf16, #tpu.memory_space<vmem>>, vector<256x128xbf16>
    %cst = arith.constant dense<0.000000e+00> : vector<512x128xf32>
    %11 = tpu.matmul %9, %10, %cst {dimension_numbers = #tpu.dot_dimension_numbers<[1], [0], [0], [1], [0, 0, 1, 1], [], []>} : vector<512x256xbf16>, vector<256x128xbf16>, vector<512x128xf32> -> vector<512x128xf32>
    %12 = arith.addf %8, %11 : vector<512x128xf32>
    %c0_9 = arith.constant 0 : index
    %c0_10 = arith.constant 0 : index
    %13 = vector.load %arg8[%c0_9, %c0_10] : memref<512x128xf32, #tpu.memory_space<vmem>>, vector<512x128xf32>
    tpu.vector_store %arg8[%c0_9, %c0_10], %12 {strides = array<i32>} : memref<512x128xf32, #tpu.memory_space<vmem>>, vector<512x128xf32>,
    %c0_i32_11 = arith.constant 0 : i32
    %14 = arith.cmpi eq, %arg2, %c0_i32_11 : i32
    %15 = arith.extui %14 : i1 to i32
    %c0_i32_12 = arith.constant 0 : i32
    %16 = arith.cmpi ne, %15, %c0_i32_12 : i32
    scf.if %16 {
      %c0_13 = arith.constant 0 : index
      %c0_14 = arith.constant 0 : index
      %17 = vector.load %arg8[%c0_13, %c0_14] : memref<512x128xf32, #tpu.memory_space<vmem>>, vector<512x128xf32>
      %c0_15 = arith.constant 0 : index
      %c0_16 = arith.constant 0 : index
      %18 = vector.load %arg5[%c0_15, %c0_16] : memref<512x128xf32, #tpu.memory_space<vmem>>, vector<512x128xf32>
      tpu.vector_store %arg5[%c0_15, %c0_16], %17 {strides = array<i32>} : memref<512x128xf32, #tpu.memory_space<vmem>>, vector<512x128xf32>,
      %c0_17 = arith.constant 0 : index
      %c0_18 = arith.constant 0 : index
      %19 = vector.load %arg6[%c0_17, %c0_18] : memref<1x128xf32, #tpu.memory_space<vmem>>, vector<1x128xf32>
      %cst_19 = arith.constant dense<0.000000e+00> : vector<128xf32>
      %20 = vector.multi_reduction <add>, %17, %cst_19 [0] : vector<512x128xf32> to vector<128xf32>
      %21 = vector.shape_cast %20 : vector<128xf32> to vector<1x128xf32>
      %22 = arith.addf %19, %21 : vector<1x128xf32>
      %c0_20 = arith.constant 0 : index
      %c0_21 = arith.constant 0 : index
      %23 = vector.load %arg6[%c0_20, %c0_21] : memref<1x128xf32, #tpu.memory_space<vmem>>, vector<1x128xf32>
      tpu.vector_store %arg6[%c0_20, %c0_21], %22 {strides = array<i32>} : memref<1x128xf32, #tpu.memory_space<vmem>>, vector<1x128xf32>,
      %c0_22 = arith.constant 0 : index
      %c0_23 = arith.constant 0 : index
      %24 = vector.load %arg7[%c0_22, %c0_23] : memref<1x128xf32, #tpu.memory_space<vmem>>, vector<1x128xf32>
      %25 = arith.mulf %17, %17 : vector<512x128xf32>
      %cst_24 = arith.constant dense<0.000000e+00> : vector<128xf32>
      %26 = vector.multi_reduction <add>, %25, %cst_24 [0] : vector<512x128xf32> to vector<128xf32>
      %27 = vector.shape_cast %26 : vector<128xf32> to vector<1x128xf32>
      %28 = arith.addf %24, %27 : vector<1x128xf32>
      %c0_25 = arith.constant 0 : index
      %c0_26 = arith.constant 0 : index
      %29 = vector.load %arg7[%c0_25, %c0_26] : memref<1x128xf32, #tpu.memory_space<vmem>>, vector<1x128xf32>
      tpu.vector_store %arg7[%c0_25, %c0_26], %28 {strides = array<i32>} : memref<1x128xf32, #tpu.memory_space<vmem>>, vector<1x128xf32>,
    } else {
    }
    return
  }
  func.func @transform_0(%arg0: i32, %arg1: i32, %arg2: i32) -> (i32, i32) {
    %c0_i32 = arith.constant 0 : i32
    return %arg1, %arg2 : i32, i32
  }
  func.func @transform_1(%arg0: i32, %arg1: i32, %arg2: i32) -> (i32, i32) {
    %c0_i32 = arith.constant 0 : i32
    return %arg2, %arg0 : i32, i32
  }
  func.func @transform_2(%arg0: i32, %arg1: i32, %arg2: i32) -> (i32, i32) {
    %c0_i32 = arith.constant 0 : i32
    return %arg1, %arg0 : i32, i32
  }
  func.func @transform_3(%arg0: i32, %arg1: i32, %arg2: i32) -> (i32, i32) {
    %c0_i32 = arith.constant 0 : i32
    %c0_i32_0 = arith.constant 0 : i32
    return %c0_i32, %arg0 : i32, i32
  }
  func.func @transform_4(%arg0: i32, %arg1: i32, %arg2: i32) -> (i32, i32) {
    %c0_i32 = arith.constant 0 : i32
    %c0_i32_0 = arith.constant 0 : i32
    return %c0_i32, %arg0 : i32, i32
  }
}

</mosaic_0001>

<bundles_post_ra>
// kernel: _matmul_bn_p.1
= control target key start
LH: loop header
LB: loop body
LE: loop exit
PB: predicated region body
PF: predicated region fallthrough
CT: control target
= control target key end

     0   :  { %10 = vsyncpa [#allocation4], 0  ;;  %s2184_s0 = inlined_call_operand.hbm [shape: bf16[512,256], index: 0, kind: input, shape index: {}]   ;;  %s2185_s1 = inlined_call_operand.hbm [shape: bf16[256,128], index: 1, kind: input, shape index: {}]   ;;  %s2186_s2 = inlined_call_operand.hbm [shape: f32[512,128], index: 2, kind: output, shape index: {0}]   ;;  %s2187_s3 = inlined_call_operand.hbm [shape: f32[1,128], index: 3, kind: output, shape index: {1}]   ;;  %s2188_s4 = inlined_call_operand.hbm [shape: f32[1,128], index: 4, kind: output, shape index: {2}]  }
   0x1   :  { %11 = vsyncpa [#allocation7], 0 }
   0x2   :  { %12 = vsyncpa [#allocation5], 0 }
   0x3   :  { %13 = vsyncpa [#allocation10], 0  ;;  %s1850_s15 = smov [#allocation3]   ;;  %s1732_s19 = scalar_lea.hbm %s2184_s0, 8192 }
   0x4   :  { %s19_s16 = sshll.u32 %s1850_s15, 4  ;;  %p1733_p0 = scmp.ne.s32.totalorder %s2184_s0, %s1732_s19  ;;  %s20_s16 = int_to_ptr.vmem [resolvable:$true] %s19_s16 }
   0x5   :  { %p1736_p1 = scmp.lt.u32.totalorder %s1732_s19, %s2184_s0 }
   0x7   :  { %p1738_p2 = pnand %p1736_p1, %p1733_p0 }
   0x9   :  { %1741 = shalt.err (!%p1738_p2)
}
   0xa   :  { %s1742_s24 = scalar_lea.vmem %s20_s16, 8192  ;;  %p1747_p4 = scmp.lt.s32.totalorder %s20_s16, %s20_s16 }
   0xb   :  { %p1743_p3 = scmp.ne.s32.totalorder %s20_s16, %s1742_s24  ;;  %p1748_p5 = scmp.lt.s32.totalorder %s1742_s24, %s1742_s24 }
   0xd   :  { %p1749_p6 = por %p1748_p5, %p1747_p4 }
   0xf   :  { %p1750_p7 = pnand %p1749_p6, %p1743_p3 }
  0x11   :  { %1753 = shalt.err (!%p1750_p7)
}
  0x12   :  { %s1851_s25 = smov 128   ;;  %s1852_s26 = smov 8  }
  0x13   :  { %25 = dma.hbm_to_vmem [thread:$0]  %s2184_s0, 8192, %s20_s16, [#allocation4], %s1851_s25, %s1851_s25, %s1852_s26  }
  0x14   :  { %s1853_s29 = smov [#allocation6]   ;;  %s1754_s7 = scalar_lea.hbm %s2185_s1, 2048 }
  0x15   :  { %s31_s30 = sshll.u32 %s1853_s29, 4  ;;  %p1755_p8 = scmp.ne.s32.totalorder %s2185_s1, %s1754_s7  ;;  %s32_s30 = int_to_ptr.vmem [resolvable:$true] %s31_s30 }
  0x16   :  { %p1758_p9 = scmp.lt.u32.totalorder %s1754_s7, %s2185_s1 }
  0x18   :  { %p1760_p10 = pnand %p1758_p9, %p1755_p8 }
  0x1a   :  { %1763 = shalt.err (!%p1760_p10)
}
  0x1b   :  { %s1764_s12 = scalar_lea.vmem %s32_s30, 2048  ;;  %p1769_p12 = scmp.lt.s32.totalorder %s32_s30, %s32_s30 }
  0x1c   :  { %p1765_p11 = scmp.ne.s32.totalorder %s32_s30, %s1764_s12  ;;  %p1770_p13 = scmp.lt.s32.totalorder %s1764_s12, %s1764_s12 }
  0x1e   :  { %p1771_p0 = por %p1770_p13, %p1769_p12 }
  0x20   :  { %p1772_p1 = pnand %p1771_p0, %p1765_p11 }
  0x22   :  { %1775 = shalt.err (!%p1772_p1)
}
  0x23   :  { %s1854_s0 = smov 64   ;;  %s1855_s13 = smov 4  }
  0x24   :  { %37 = dma.hbm_to_vmem [thread:$0]  %s2185_s1, 2048, %s32_s30, [#allocation7], %s1854_s0, %s1854_s0, %s1855_s13  }
  0x25   :  { %1842 = dma.done.wait [#allocation4], 8192  }
  0x26   :  { %1843 = vsyncadd [#allocation4], 4294959104 }
  0x27   :  { %1844 = dma.done.wait [#allocation7], 2048  }
  0x28   :  { %1845 = vsyncadd [#allocation7], 4294965248  ;;  %v1856_v0 = vmov 0   ;;  %v1620_v1 = vld [vmem:[#allocation6] sm:$0xff]   ;;  %v1621_v2 = vld [vmem:[#allocation6 + $0x8] sm:$0xff]   ;;  %s1858_s1 = smov [#allocation8]  }
  0x29   :  { %696 = vmatprep.subr.bf16.mxu0 %v1856_v0  ;;  %1577 = vmatprep.subr.bf16.mxu1 %v1856_v0  ;;  %v1622_v3 = vld [vmem:[#allocation6 + $0x10] sm:$0xff]   ;;  %v1623_v4 = vld [vmem:[#allocation6 + $0x18] sm:$0xff]   ;;  %v1624_v5 = vld [vmem:[#allocation6 + $0x20] sm:$0xff]   ;;  %s1457_s16 = sshll.u32 %s1858_s1, 4  ;;  %s1458_s16 = int_to_ptr.vmem [resolvable:$true] %s1457_s16 }
  0x2a   :  { %697 = vmatpush1.bf16.msra.mxu0 %v1620_v1  ;;  %1593 = vmatpush1.bf16.msra.mxu1 %v1620_v1  ;;  %v1638_v6 = vld [vmem:[#allocation3 + $0x4] ss:$8 sps:$4 sm:$0xff]   ;;  %v1626_v8 = vld [vmem:[#allocation6 + $0x30] sm:$0xff]   ;;  %v1627_v9 = vld [vmem:[#allocation6 + $0x38] sm:$0xff]   ;;  %s1776_s17 = scalar_lea.vmem %s1458_s16, 8192  ;;  %p1781_p3 = scmp.lt.s32.totalorder %s1458_s16, %s1458_s16 }
  0x2b   :  { %698 = vmatprep.subr.bf16.mxu0 %v1856_v0  ;;  %1578 = vmatprep.subr.bf16.mxu1 %v1856_v0  ;;  %v1625_v7 = vld [vmem:[#allocation6 + $0x28] sm:$0xff]   ;;  %v1628_v11 = vld [vmem:[#allocation6 + $0x40] sm:$0xff]   ;;  %v1630_v13 = vld [vmem:[#allocation6 + $0x50] sm:$0xff]   ;;  %p1777_p2 = scmp.ne.s32.totalorder %s1458_s16, %s1776_s17  ;;  %p1782_p4 = scmp.lt.s32.totalorder %s1776_s17, %s1776_s17 }
  0x2c   :  { %728 = vmatprep.mubr.bf16.mxu0 %v1638_v6  ;;  %v1662_v10 = vld [vmem:[#allocation3 + $0x104] ss:$8 sps:$4 sm:$0xff]   ;;  %v1631_v14 = vld [vmem:[#allocation6 + $0x58] sm:$0xff]   ;;  %v1634_v17 = vld [vmem:[#allocation6 + $0x70] sm:$0xff]  }
  0x2d   :  { %856 = vmatprep.mubr.bf16.mxu1 %v1662_v10  ;;  %v1629_v12 = vld [vmem:[#allocation6 + $0x48] sm:$0xff]   ;;  %v1632_v15 = vld [vmem:[#allocation6 + $0x60] sm:$0xff]   ;;  %v1635_v18 = vld [vmem:[#allocation6 + $0x78] sm:$0xff]   ;;  %p1783_p5 = por %p1782_p4, %p1781_p3 }
  0x2e   :  { %699 = vmatpush1.bf16.msra.mxu0 %v1621_v2  ;;  %1594 = vmatpush1.bf16.msra.mxu1 %v1621_v2  ;;  %v1633_v16 = vld [vmem:[#allocation6 + $0x68] sm:$0xff]   ;;  %v1639_v21 = vld [vmem:[#allocation3 + $0x14] ss:$8 sps:$4 sm:$0xff]   ;;  %v1641_v23 = vld [vmem:[#allocation3 + $0x10] ss:$8 sps:$4 sm:$0xff]  }
  0x2f   :  { %700 = vmatprep.subr.bf16.mxu0 %v1856_v0  ;;  %1579 = vmatprep.subr.bf16.mxu1 %v1856_v0  ;;  %v1636_v19 = vld [vmem:[#allocation3] ss:$8 sps:$4 sm:$0xff]   ;;  %v1666_v22 = vld [vmem:[#allocation3 + $0x114] ss:$8 sps:$4 sm:$0xff]   ;;  %v1668_v24 = vld [vmem:[#allocation3 + $0x110] ss:$8 sps:$4 sm:$0xff]   ;;  %p1784_p6 = pnand %p1783_p5, %p1777_p2 }
  0x30   :  { %v1660_v20 = vld [vmem:[#allocation3 + $0x100] ss:$8 sps:$4 sm:$0xff]   ;;  %v1642_v25 = vld [vmem:[#allocation3 + $0x24] ss:$8 sps:$4 sm:$0xff]   ;;  %v1645_v29 = vld [vmem:[#allocation3 + $0x34] ss:$8 sps:$4 sm:$0xff]  }
  0x31   :  { %v1672_v26 = vld [vmem:[#allocation3 + $0x124] ss:$8 sps:$4 sm:$0xff]   ;;  %v1644_v27 = vld [vmem:[#allocation3 + $0x20] ss:$8 sps:$4 sm:$0xff]   ;;  %v1678_v30 = vld [vmem:[#allocation3 + $0x134] ss:$8 sps:$4 sm:$0xff]  }
  0x32   :  { %701 = vmatpush1.bf16.msra.mxu0 %v1622_v3  ;;  %1595 = vmatpush1.bf16.msra.mxu1 %v1622_v3  ;;  %v1674_v28 = vld [vmem:[#allocation3 + $0x120] ss:$8 sps:$4 sm:$0xff]   ;;  %v1647_v31 = vld [vmem:[#allocation3 + $0x30] ss:$8 sps:$4 sm:$0xff]   ;;  %v1648_v33 = vld [vmem:[#allocation3 + $0x44] ss:$8 sps:$4 sm:$0xff]  }
  0x33   :  { %702 = vmatprep.subr.bf16.mxu0 %v1856_v0  ;;  %1580 = vmatprep.subr.bf16.mxu1 %v1856_v0  ;;  %v1680_v32 = vld [vmem:[#allocation3 + $0x130] ss:$8 sps:$4 sm:$0xff]   ;;  %v1684_v34 = vld [vmem:[#allocation3 + $0x144] ss:$8 sps:$4 sm:$0xff]   ;;  %v1650_v35 = vld [vmem:[#allocation3 + $0x40] ss:$8 sps:$4 sm:$0xff]  }
  0x34   :  { %v1686_v36 = vld [vmem:[#allocation3 + $0x140] ss:$8 sps:$4 sm:$0xff]   ;;  %v1651_v37 = vld [vmem:[#allocation3 + $0x54] ss:$8 sps:$4 sm:$0xff]   ;;  %v1653_v39 = vld [vmem:[#allocation3 + $0x50] ss:$8 sps:$4 sm:$0xff]  }
  0x35   :  { %v1690_v38 = vld [vmem:[#allocation3 + $0x154] ss:$8 sps:$4 sm:$0xff]   ;;  %v1692_v40 = vld [vmem:[#allocation3 + $0x150] ss:$8 sps:$4 sm:$0xff]   ;;  %v1654_v41 = vld [vmem:[#allocation3 + $0x64] ss:$8 sps:$4 sm:$0xff]  }
  0x36   :  { %703 = vmatpush1.bf16.msra.mxu0 %v1623_v4  ;;  %1596 = vmatpush1.bf16.msra.mxu1 %v1623_v4  ;;  %v1696_v42 = vld [vmem:[#allocation3 + $0x164] ss:$8 sps:$4 sm:$0xff]   ;;  %v1656_v43 = vld [vmem:[#allocation3 + $0x60] ss:$8 sps:$4 sm:$0xff]   ;;  %v1657_v45 = vld [vmem:[#allocation3 + $0x74] ss:$8 sps:$4 sm:$0xff]  }
  0x37   :  { %704 = vmatprep.subr.bf16.mxu0 %v1856_v0  ;;  %1581 = vmatprep.subr.bf16.mxu1 %v1856_v0  ;;  %v1698_v44 = vld [vmem:[#allocation3 + $0x160] ss:$8 sps:$4 sm:$0xff]   ;;  %v1702_v46 = vld [vmem:[#allocation3 + $0x174] ss:$8 sps:$4 sm:$0xff]   ;;  %v1659_v47 = vld [vmem:[#allocation3 + $0x70] ss:$8 sps:$4 sm:$0xff]  }
  0x38   :  { %v1704_v48 = vld [vmem:[#allocation3 + $0x170] ss:$8 sps:$4 sm:$0xff]   ;;  %v1663_v49 = vld [vmem:[#allocation3 + $0x84] ss:$8 sps:$4 sm:$0xff]   ;;  %v1665_v51 = vld [vmem:[#allocation3 + $0x80] ss:$8 sps:$4 sm:$0xff]  }
  0x39   :  { %v1708_v50 = vld [vmem:[#allocation3 + $0x184] ss:$8 sps:$4 sm:$0xff]   ;;  %v1710_v52 = vld [vmem:[#allocation3 + $0x180] ss:$8 sps:$4 sm:$0xff]   ;;  %v1669_v53 = vld [vmem:[#allocation3 + $0x94] ss:$8 sps:$4 sm:$0xff]  }
  0x3a   :  { %705 = vmatpush1.bf16.msra.mxu0 %v1624_v5  ;;  %1597 = vmatpush1.bf16.msra.mxu1 %v1624_v5  ;;  %v1711_v54 = vld [vmem:[#allocation3 + $0x194] ss:$8 sps:$4 sm:$0xff]   ;;  %v1671_v55 = vld [vmem:[#allocation3 + $0x90] ss:$8 sps:$4 sm:$0xff]   ;;  %v1675_v57 = vld [vmem:[#allocation3 + $0xa4] ss:$8 sps:$4 sm:$0xff]  }
  0x3b   :  { %706 = vmatprep.subr.bf16.mxu0 %v1856_v0  ;;  %1582 = vmatprep.subr.bf16.mxu1 %v1856_v0  ;;  %v1713_v56 = vld [vmem:[#allocation3 + $0x190] ss:$8 sps:$4 sm:$0xff]   ;;  %v1714_v58 = vld [vmem:[#allocation3 + $0x1a4] ss:$8 sps:$4 sm:$0xff]   ;;  %v1677_v59 = vld [vmem:[#allocation3 + $0xa0] ss:$8 sps:$4 sm:$0xff]  }
  0x3c   :  { %v1716_v60 = vld [vmem:[#allocation3 + $0x1a0] ss:$8 sps:$4 sm:$0xff]   ;;  %v1681_v61 = vld [vmem:[#allocation3 + $0xb4] ss:$8 sps:$4 sm:$0xff]   ;;  %v1683_v63 = vld [vmem:[#allocation3 + $0xb0] ss:$8 sps:$4 sm:$0xff]  }
  0x3d   :  { %v1717_v62 = vld [vmem:[#allocation3 + $0x1b4] ss:$8 sps:$4 sm:$0xff]   ;;  %v1687_v1 = vld [vmem:[#allocation3 + $0xc4] ss:$8 sps:$4 sm:$0xff]   ;;  %v1689_v3 = vld [vmem:[#allocation3 + $0xc0] ss:$8 sps:$4 sm:$0xff]  }
  0x3e   :  { %707 = vmatpush1.bf16.msra.mxu0 %v1625_v7  ;;  %1598 = vmatpush1.bf16.msra.mxu1 %v1625_v7  ;;  %v1720_v2 = vld [vmem:[#allocation3 + $0x1c4] ss:$8 sps:$4 sm:$0xff]   ;;  %v1722_v4 = vld [vmem:[#allocation3 + $0x1c0] ss:$8 sps:$4 sm:$0xff]   ;;  %v1693_v5 = vld [vmem:[#allocation3 + $0xd4] ss:$8 sps:$4 sm:$0xff]  }
  0x3f   :  { %708 = vmatprep.subr.bf16.mxu0 %v1856_v0  ;;  %1583 = vmatprep.subr.bf16.mxu1 %v1856_v0  ;;  %v1723_v6 = vld [vmem:[#allocation3 + $0x1d4] ss:$8 sps:$4 sm:$0xff]   ;;  %v1695_v7 = vld [vmem:[#allocation3 + $0xd0] ss:$8 sps:$4 sm:$0xff]   ;;  %v1726_v10 = vld [vmem:[#allocation3 + $0x1e4] ss:$8 sps:$4 sm:$0xff]  }
  0x42   :  { %709 = vmatpush1.bf16.msra.mxu0 %v1626_v8  ;;  %1599 = vmatpush1.bf16.msra.mxu1 %v1626_v8  ;;  %v1725_v8 = vld [vmem:[#allocation3 + $0x1d0] ss:$8 sps:$4 sm:$0xff]  }
  0x43   :  { %710 = vmatprep.subr.bf16.mxu0 %v1856_v0  ;;  %1584 = vmatprep.subr.bf16.mxu1 %v1856_v0 }
  0x46   :  { %711 = vmatpush1.bf16.msra.mxu0 %v1627_v9  ;;  %1600 = vmatpush1.bf16.msra.mxu1 %v1627_v9  ;;  %v1699_v9 = vld [vmem:[#allocation3 + $0xe4] ss:$8 sps:$4 sm:$0xff]  }
  0x47   :  { %712 = vmatprep.subr.bf16.mxu0 %v1856_v0  ;;  %1585 = vmatprep.subr.bf16.mxu1 %v1856_v0 }
  0x4a   :  { %713 = vmatpush1.bf16.msra.mxu0 %v1628_v11  ;;  %1601 = vmatpush1.bf16.msra.mxu1 %v1628_v11  ;;  %v1701_v11 = vld [vmem:[#allocation3 + $0xe0] ss:$8 sps:$4 sm:$0xff]  }
  0x4b   :  { %714 = vmatprep.subr.bf16.mxu0 %v1856_v0  ;;  %1586 = vmatprep.subr.bf16.mxu1 %v1856_v0 }
  0x4e   :  { %715 = vmatpush1.bf16.msra.mxu0 %v1629_v12  ;;  %1602 = vmatpush1.bf16.msra.mxu1 %v1629_v12  ;;  %v1728_v12 = vld [vmem:[#allocation3 + $0x1e0] ss:$8 sps:$4 sm:$0xff]  }
  0x4f   :  { %716 = vmatprep.subr.bf16.mxu0 %v1856_v0  ;;  %1587 = vmatprep.subr.bf16.mxu1 %v1856_v0 }
  0x52   :  { %717 = vmatpush1.bf16.msra.mxu0 %v1630_v13  ;;  %1603 = vmatpush1.bf16.msra.mxu1 %v1630_v13  ;;  %v1705_v13 = vld [vmem:[#allocation3 + $0xf4] ss:$8 sps:$4 sm:$0xff]  }
  0x53   :  { %718 = vmatprep.subr.bf16.mxu0 %v1856_v0  ;;  %1588 = vmatprep.subr.bf16.mxu1 %v1856_v0 }
  0x56   :  { %719 = vmatpush1.bf16.msra.mxu0 %v1631_v14  ;;  %1604 = vmatpush1.bf16.msra.mxu1 %v1631_v14  ;;  %v1729_v14 = vld [vmem:[#allocation3 + $0x1f4] ss:$8 sps:$4 sm:$0xff]  }
  0x57   :  { %720 = vmatprep.subr.bf16.mxu0 %v1856_v0  ;;  %1589 = vmatprep.subr.bf16.mxu1 %v1856_v0 }
  0x5a   :  { %721 = vmatpush1.bf16.msra.mxu0 %v1632_v15  ;;  %1605 = vmatpush1.bf16.msra.mxu1 %v1632_v15  ;;  %v1707_v15 = vld [vmem:[#allocation3 + $0xf0] ss:$8 sps:$4 sm:$0xff]  }
  0x5b   :  { %722 = vmatprep.subr.bf16.mxu0 %v1856_v0  ;;  %1590 = vmatprep.subr.bf16.mxu1 %v1856_v0 }
  0x5e   :  { %723 = vmatpush1.bf16.msra.mxu0 %v1633_v16  ;;  %1606 = vmatpush1.bf16.msra.mxu1 %v1633_v16  ;;  %v1731_v16 = vld [vmem:[#allocation3 + $0x1f0] ss:$8 sps:$4 sm:$0xff]  }
  0x5f   :  { %724 = vmatprep.subr.bf16.mxu0 %v1856_v0  ;;  %1591 = vmatprep.subr.bf16.mxu1 %v1856_v0 }
  0x62   :  { %725 = vmatpush1.bf16.msra.mxu0 %v1634_v17  ;;  %1607 = vmatpush1.bf16.msra.mxu1 %v1634_v17 }
  0x63   :  { %726 = vmatprep.subr.bf16.mxu0 %v1856_v0  ;;  %1592 = vmatprep.subr.bf16.mxu1 %v1856_v0  ;;  %v1719_v0 = vld [vmem:[#allocation3 + $0x1b0] ss:$8 sps:$4 sm:$0xff]  }
  0x66   :  { %727 = vmatpush1.bf16.msra.mxu0 %v1635_v18  ;;  %1608 = vmatpush1.bf16.msra.mxu1 %v1635_v18 }
  0x69   :  { %729 = vmatmul.mubr.bf16.vlgmr.msra.gmra.mrb[0].mxu0 %v1636_v19  ;;  %857 = vmatmul.mubr.bf16.vlgmr.msra.gmra.mrb[0].mxu1 %v1660_v20 }
  0x6a   :  { %736 = vmatprep.mubr.bf16.mxu0 %v1639_v21  ;;  %864 = vmatprep.mubr.bf16.mxu1 %v1666_v22 }
  0x71   :  { %737 = vmatmul.mubr.bf16.gmra.mrb[4].mxu0 %v1641_v23  ;;  %865 = vmatmul.mubr.bf16.gmra.mrb[4].mxu1 %v1668_v24 }
  0x72   :  { %744 = vmatprep.mubr.bf16.mxu0 %v1642_v25  ;;  %872 = vmatprep.mubr.bf16.mxu1 %v1672_v26 }
  0x79   :  { %745 = vmatmul.mubr.bf16.gmra.mrb[8].mxu0 %v1644_v27  ;;  %873 = vmatmul.mubr.bf16.gmra.mrb[8].mxu1 %v1674_v28 }
  0x7a   :  { %752 = vmatprep.mubr.bf16.mxu0 %v1645_v29  ;;  %880 = vmatprep.mubr.bf16.mxu1 %v1678_v30 }
  0x81   :  { %753 = vmatmul.mubr.bf16.gmra.mrb[12].mxu0 %v1647_v31  ;;  %881 = vmatmul.mubr.bf16.gmra.mrb[12].mxu1 %v1680_v32 }
  0x82   :  { %760 = vmatprep.mubr.bf16.mxu0 %v1648_v33  ;;  %888 = vmatprep.mubr.bf16.mxu1 %v1684_v34 }
  0x89   :  { %761 = vmatmul.mubr.bf16.gmra.mrb[16].mxu0 %v1650_v35  ;;  %889 = vmatmul.mubr.bf16.gmra.mrb[16].mxu1 %v1686_v36 }
  0x8a   :  { %768 = vmatprep.mubr.bf16.mxu0 %v1651_v37  ;;  %896 = vmatprep.mubr.bf16.mxu1 %v1690_v38 }
  0x91   :  { %769 = vmatmul.mubr.bf16.gmra.mrb[20].mxu0 %v1653_v39  ;;  %897 = vmatmul.mubr.bf16.gmra.mrb[20].mxu1 %v1692_v40 }
  0x92   :  { %776 = vmatprep.mubr.bf16.mxu0 %v1654_v41  ;;  %904 = vmatprep.mubr.bf16.mxu1 %v1696_v42 }
  0x99   :  { %777 = vmatmul.mubr.bf16.gmra.mrb[24].mxu0 %v1656_v43  ;;  %905 = vmatmul.mubr.bf16.gmra.mrb[24].mxu1 %v1698_v44 }
  0x9a   :  { %784 = vmatprep.mubr.bf16.mxu0 %v1657_v45  ;;  %912 = vmatprep.mubr.bf16.mxu1 %v1702_v46 }
  0xa1   :  { %785 = vmatmul.mubr.bf16.gmra.mrb[28].mxu0 %v1659_v47  ;;  %913 = vmatmul.mubr.bf16.gmra.mrb[28].mxu1 %v1704_v48 }
  0xa2   :  { %792 = vmatprep.mubr.bf16.mxu0 %v1663_v49  ;;  %920 = vmatprep.mubr.bf16.mxu1 %v1708_v50 }
  0xa9   :  { %793 = vmatmul.mubr.bf16.gmra.mrb[32].mxu0 %v1665_v51  ;;  %921 = vmatmul.mubr.bf16.gmra.mrb[32].mxu1 %v1710_v52 }
  0xaa   :  { %800 = vmatprep.mubr.bf16.mxu0 %v1669_v53  ;;  %928 = vmatprep.mubr.bf16.mxu1 %v1711_v54 }
  0xb1   :  { %801 = vmatmul.mubr.bf16.gmra.mrb[36].mxu0 %v1671_v55  ;;  %929 = vmatmul.mubr.bf16.gmra.mrb[36].mxu1 %v1713_v56 }
  0xb2   :  { %808 = vmatprep.mubr.bf16.mxu0 %v1675_v57  ;;  %936 = vmatprep.mubr.bf16.mxu1 %v1714_v58 }
  0xb9   :  { %809 = vmatmul.mubr.bf16.gmra.mrb[40].mxu0 %v1677_v59  ;;  %937 = vmatmul.mubr.bf16.gmra.mrb[40].mxu1 %v1716_v60 }
  0xba   :  { %816 = vmatprep.mubr.bf16.mxu0 %v1681_v61  ;;  %944 = vmatprep.mubr.bf16.mxu1 %v1717_v62 }
  0xc1   :  { %817 = vmatmul.mubr.bf16.gmra.mrb[44].mxu0 %v1683_v63  ;;  %945 = vmatmul.mubr.bf16.gmra.mrb[44].mxu1 %v1719_v0 }
  0xc2   :  { %824 = vmatprep.mubr.bf16.mxu0 %v1687_v1  ;;  %952 = vmatprep.mubr.bf16.mxu1 %v1720_v2 }
  0xc9   :  { %825 = vmatmul.mubr.bf16.gmra.mrb[48].mxu0 %v1689_v3  ;;  %953 = vmatmul.mubr.bf16.gmra.mrb[48].mxu1 %v1722_v4 }
  0xca   :  { %832 = vmatprep.mubr.bf16.mxu0 %v1693_v5  ;;  %960 = vmatprep.mubr.bf16.mxu1 %v1723_v6 }
  0xd1   :  { %833 = vmatmul.mubr.bf16.gmra.mrb[52].mxu0 %v1695_v7  ;;  %961 = vmatmul.mubr.bf16.gmra.mrb[52].mxu1 %v1725_v8 }
  0xd2   :  { %840 = vmatprep.mubr.bf16.mxu0 %v1699_v9  ;;  %968 = vmatprep.mubr.bf16.mxu1 %v1726_v10 }
  0xd9   :  { %841 = vmatmul.mubr.bf16.gmra.mrb[56].mxu0 %v1701_v11  ;;  %969 = vmatmul.mubr.bf16.gmra.mrb[56].mxu1 %v1728_v12 }
  0xda   :  { %848 = vmatprep.mubr.bf16.mxu0 %v1705_v13  ;;  %976 = vmatprep.mubr.bf16.mxu1 %v1729_v14 }
  0xe1   :  { %849 = vmatmul.mubr.bf16.gmra.mrb[60].mxu0 %v1707_v15  ;;  %977 = vmatmul.mubr.bf16.gmra.mrb[60].mxu1 %v1731_v16 }
 0x13c   :  { %v730_v17 = vpop.f32.mrb[0].mxu0  ;;  %v1945_v18 = vpop.f32.mrb[0].mxu1 }
 0x13d   :  { %1180 = vst [vmem:[#allocation8] sm:$0xff] %v730_v17  ;;  %v732_v19 = vpop.f32.mrb[1].mxu0  ;;  %1212 = vst [vmem:[#allocation8 + $0x100] sm:$0xff] %v1945_v18  ;;  %v860_v20 = vpop.f32.mrb[1].mxu1  ;;  %v1317_v23 = vmul.f32 %v730_v17, %v730_v17 }
 0x13e   :  { %v733_v21 = vpop.f32.mrb[2].mxu0  ;;  %v1948_v22 = vpop.f32.mrb[2].mxu1 }
 0x13f   :  { %1181 = vst [vmem:[#allocation8 + $0x8] sm:$0xff] %v733_v21  ;;  %v1245_v24 = vadd.f32 %v733_v21, %v730_v17  ;;  %v1318_v25 = vmul.f32 %v733_v21, %v733_v21  ;;  %v735_v26 = vpop.f32.mrb[3].mxu0  ;;  %1213 = vst [vmem:[#allocation8 + $0x108] sm:$0xff] %v1948_v22  ;;  %v863_v27 = vpop.f32.mrb[3].mxu1 }
 0x141   :  { %v1381_v28 = vadd.f32 %v1318_v25, %v1317_v23 }
 0x144   :  { %v738_v29 = vpop.f32.mrb[4].mxu0  ;;  %v1951_v30 = vpop.f32.mrb[4].mxu1 }
 0x145   :  { %1182 = vst [vmem:[#allocation8 + $0x10] sm:$0xff] %v738_v29  ;;  %v1246_v31 = vadd.f32 %v1245_v24, %v738_v29  ;;  %v1319_v32 = vmul.f32 %v738_v29, %v738_v29  ;;  %v740_v33 = vpop.f32.mrb[5].mxu0  ;;  %1214 = vst [vmem:[#allocation8 + $0x110] sm:$0xff] %v1951_v30  ;;  %v868_v34 = vpop.f32.mrb[5].mxu1 }
 0x146   :  { %v741_v35 = vpop.f32.mrb[6].mxu0  ;;  %v1954_v36 = vpop.f32.mrb[6].mxu1 }
 0x147   :  { %v1382_v37 = vadd.f32 %v1381_v28, %v1319_v32  ;;  %1183 = vst [vmem:[#allocation8 + $0x18] sm:$0xff] %v741_v35  ;;  %v1247_v38 = vadd.f32 %v1246_v31, %v741_v35  ;;  %v1320_v39 = vmul.f32 %v741_v35, %v741_v35  ;;  %v743_v40 = vpop.f32.mrb[7].mxu0  ;;  %1215 = vst [vmem:[#allocation8 + $0x118] sm:$0xff] %v1954_v36  ;;  %v871_v41 = vpop.f32.mrb[7].mxu1 }
 0x149   :  { %v1383_v42 = vadd.f32 %v1382_v37, %v1320_v39 }
 0x14c   :  { %v746_v43 = vpop.f32.mrb[8].mxu0  ;;  %v1957_v44 = vpop.f32.mrb[8].mxu1 }
 0x14d   :  { %1184 = vst [vmem:[#allocation8 + $0x20] sm:$0xff] %v746_v43  ;;  %v1248_v45 = vadd.f32 %v1247_v38, %v746_v43  ;;  %v1321_v46 = vmul.f32 %v746_v43, %v746_v43  ;;  %v748_v47 = vpop.f32.mrb[9].mxu0  ;;  %1216 = vst [vmem:[#allocation8 + $0x120] sm:$0xff] %v1957_v44  ;;  %v876_v48 = vpop.f32.mrb[9].mxu1 }
 0x14e   :  { %v749_v49 = vpop.f32.mrb[10].mxu0  ;;  %v1960_v50 = vpop.f32.mrb[10].mxu1 }
 0x14f   :  { %v1384_v51 = vadd.f32 %v1383_v42, %v1321_v46  ;;  %1185 = vst [vmem:[#allocation8 + $0x28] sm:$0xff] %v749_v49  ;;  %v1249_v52 = vadd.f32 %v1248_v45, %v749_v49  ;;  %v1322_v53 = vmul.f32 %v749_v49, %v749_v49  ;;  %v751_v54 = vpop.f32.mrb[11].mxu0  ;;  %1217 = vst [vmem:[#allocation8 + $0x128] sm:$0xff] %v1960_v50  ;;  %v879_v55 = vpop.f32.mrb[11].mxu1 }
 0x151   :  { %v1385_v56 = vadd.f32 %v1384_v51, %v1322_v53 }
 0x154   :  { %v754_v57 = vpop.f32.mrb[12].mxu0  ;;  %v1963_v58 = vpop.f32.mrb[12].mxu1 }
 0x155   :  { %1186 = vst [vmem:[#allocation8 + $0x30] sm:$0xff] %v754_v57  ;;  %v1250_v59 = vadd.f32 %v1249_v52, %v754_v57  ;;  %v1323_v60 = vmul.f32 %v754_v57, %v754_v57  ;;  %v756_v61 = vpop.f32.mrb[13].mxu0  ;;  %1218 = vst [vmem:[#allocation8 + $0x130] sm:$0xff] %v1963_v58  ;;  %v884_v62 = vpop.f32.mrb[13].mxu1 }
 0x156   :  { %v757_v63 = vpop.f32.mrb[14].mxu0  ;;  %v1966_v0 = vpop.f32.mrb[14].mxu1 }
 0x157   :  { %v1386_v1 = vadd.f32 %v1385_v56, %v1323_v60  ;;  %1187 = vst [vmem:[#allocation8 + $0x38] sm:$0xff] %v757_v63  ;;  %v1251_v2 = vadd.f32 %v1250_v59, %v757_v63  ;;  %v1324_v3 = vmul.f32 %v757_v63, %v757_v63  ;;  %v759_v4 = vpop.f32.mrb[15].mxu0  ;;  %1219 = vst [vmem:[#allocation8 + $0x138] sm:$0xff] %v1966_v0  ;;  %v887_v5 = vpop.f32.mrb[15].mxu1 }
 0x159   :  { %v1387_v6 = vadd.f32 %v1386_v1, %v1324_v3 }
 0x15c   :  { %v762_v7 = vpop.f32.mrb[16].mxu0  ;;  %v1969_v8 = vpop.f32.mrb[16].mxu1 }
 0x15d   :  { %1188 = vst [vmem:[#allocation8 + $0x40] sm:$0xff] %v762_v7  ;;  %v1252_v9 = vadd.f32 %v1251_v2, %v762_v7  ;;  %v1325_v10 = vmul.f32 %v762_v7, %v762_v7  ;;  %v764_v11 = vpop.f32.mrb[17].mxu0  ;;  %1220 = vst [vmem:[#allocation8 + $0x140] sm:$0xff] %v1969_v8  ;;  %v892_v12 = vpop.f32.mrb[17].mxu1 }
 0x15e   :  { %v765_v13 = vpop.f32.mrb[18].mxu0  ;;  %v1972_v14 = vpop.f32.mrb[18].mxu1 }
 0x15f   :  { %v1388_v15 = vadd.f32 %v1387_v6, %v1325_v10  ;;  %1189 = vst [vmem:[#allocation8 + $0x48] sm:$0xff] %v765_v13  ;;  %v1253_v16 = vadd.f32 %v1252_v9, %v765_v13  ;;  %v1326_v17 = vmul.f32 %v765_v13, %v765_v13  ;;  %v767_v19 = vpop.f32.mrb[19].mxu0  ;;  %1221 = vst [vmem:[#allocation8 + $0x148] sm:$0xff] %v1972_v14  ;;  %v895_v20 = vpop.f32.mrb[19].mxu1 }
 0x161   :  { %v1389_v21 = vadd.f32 %v1388_v15, %v1326_v17  ;;  %v1857_v15 = vmov 0.0  }
 0x162   :  { %118 = vst [vmem:[#allocation9] sm:$0x1] %v1857_v15  ;;  %119 = vst [vmem:[#allocation11] sm:$0x1] %v1857_v15 }
 0x164   :  { %v770_v23 = vpop.f32.mrb[20].mxu0  ;;  %v1975_v24 = vpop.f32.mrb[20].mxu1 }
 0x165   :  { %1190 = vst [vmem:[#allocation8 + $0x50] sm:$0xff] %v770_v23  ;;  %v1254_v25 = vadd.f32 %v1253_v16, %v770_v23  ;;  %v1327_v26 = vmul.f32 %v770_v23, %v770_v23  ;;  %v772_v27 = vpop.f32.mrb[21].mxu0  ;;  %1222 = vst [vmem:[#allocation8 + $0x150] sm:$0xff] %v1975_v24  ;;  %v900_v28 = vpop.f32.mrb[21].mxu1 }
 0x166   :  { %v773_v29 = vpop.f32.mrb[22].mxu0  ;;  %v1978_v31 = vpop.f32.mrb[22].mxu1 }
 0x167   :  { %v1390_v32 = vadd.f32 %v1389_v21, %v1327_v26  ;;  %1191 = vst [vmem:[#allocation8 + $0x58] sm:$0xff] %v773_v29  ;;  %v1255_v33 = vadd.f32 %v1254_v25, %v773_v29  ;;  %v1328_v34 = vmul.f32 %v773_v29, %v773_v29  ;;  %v775_v35 = vpop.f32.mrb[23].mxu0  ;;  %1223 = vst [vmem:[#allocation8 + $0x158] sm:$0xff] %v1978_v31  ;;  %v903_v37 = vpop.f32.mrb[23].mxu1 }
 0x169   :  { %v1391_v38 = vadd.f32 %v1390_v32, %v1328_v34 }
 0x16c   :  { %v778_v39 = vpop.f32.mrb[24].mxu0  ;;  %v1981_v40 = vpop.f32.mrb[24].mxu1 }
 0x16d   :  { %1192 = vst [vmem:[#allocation8 + $0x60] sm:$0xff] %v778_v39  ;;  %v1256_v41 = vadd.f32 %v1255_v33, %v778_v39  ;;  %v1329_v42 = vmul.f32 %v778_v39, %v778_v39  ;;  %v780_v43 = vpop.f32.mrb[25].mxu0  ;;  %1224 = vst [vmem:[#allocation8 + $0x160] sm:$0xff] %v1981_v40  ;;  %v908_v45 = vpop.f32.mrb[25].mxu1 }
 0x16e   :  { %v781_v46 = vpop.f32.mrb[26].mxu0  ;;  %v1984_v47 = vpop.f32.mrb[26].mxu1 }
 0x16f   :  { %v1392_v48 = vadd.f32 %v1391_v38, %v1329_v42  ;;  %1193 = vst [vmem:[#allocation8 + $0x68] sm:$0xff] %v781_v46  ;;  %v1257_v49 = vadd.f32 %v1256_v41, %v781_v46  ;;  %v1330_v51 = vmul.f32 %v781_v46, %v781_v46  ;;  %v783_v52 = vpop.f32.mrb[27].mxu0  ;;  %1225 = vst [vmem:[#allocation8 + $0x168] sm:$0xff] %v1984_v47  ;;  %v911_v53 = vpop.f32.mrb[27].mxu1 }
 0x171   :  { %v1393_v54 = vadd.f32 %v1392_v48, %v1330_v51 }
 0x174   :  { %v786_v55 = vpop.f32.mrb[28].mxu0  ;;  %v1987_v56 = vpop.f32.mrb[28].mxu1 }
 0x175   :  { %1194 = vst [vmem:[#allocation8 + $0x70] sm:$0xff] %v786_v55  ;;  %v1258_v57 = vadd.f32 %v1257_v49, %v786_v55  ;;  %v1331_v59 = vmul.f32 %v786_v55, %v786_v55  ;;  %v788_v60 = vpop.f32.mrb[29].mxu0  ;;  %1226 = vst [vmem:[#allocation8 + $0x170] sm:$0xff] %v1987_v56  ;;  %v916_v61 = vpop.f32.mrb[29].mxu1 }
 0x176   :  { %v789_v62 = vpop.f32.mrb[30].mxu0  ;;  %v1990_v63 = vpop.f32.mrb[30].mxu1 }
 0x177   :  { %v1394_v1 = vadd.f32 %v1393_v54, %v1331_v59  ;;  %1195 = vst [vmem:[#allocation8 + $0x78] sm:$0xff] %v789_v62  ;;  %v1259_v2 = vadd.f32 %v1258_v57, %v789_v62  ;;  %v1332_v3 = vmul.f32 %v789_v62, %v789_v62  ;;  %v791_v4 = vpop.f32.mrb[31].mxu0  ;;  %1227 = vst [vmem:[#allocation8 + $0x178] sm:$0xff] %v1990_v63  ;;  %v919_v5 = vpop.f32.mrb[31].mxu1 }
 0x179   :  { %v1395_v6 = vadd.f32 %v1394_v1, %v1332_v3 }
 0x17c   :  { %v794_v7 = vpop.f32.mrb[32].mxu0  ;;  %v1993_v9 = vpop.f32.mrb[32].mxu1 }
 0x17d   :  { %1196 = vst [vmem:[#allocation8 + $0x80] sm:$0xff] %v794_v7  ;;  %v1260_v10 = vadd.f32 %v1259_v2, %v794_v7  ;;  %v1333_v11 = vmul.f32 %v794_v7, %v794_v7  ;;  %v796_v12 = vpop.f32.mrb[33].mxu0  ;;  %1228 = vst [vmem:[#allocation8 + $0x180] sm:$0xff] %v1993_v9  ;;  %v924_v13 = vpop.f32.mrb[33].mxu1 }
 0x17e   :  { %v797_v16 = vpop.f32.mrb[34].mxu0  ;;  %v1996_v17 = vpop.f32.mrb[34].mxu1 }
 0x17f   :  { %v1396_v19 = vadd.f32 %v1395_v6, %v1333_v11  ;;  %1197 = vst [vmem:[#allocation8 + $0x88] sm:$0xff] %v797_v16  ;;  %v1261_v20 = vadd.f32 %v1260_v10, %v797_v16  ;;  %v1334_v21 = vmul.f32 %v797_v16, %v797_v16  ;;  %v799_v23 = vpop.f32.mrb[35].mxu0  ;;  %1229 = vst [vmem:[#allocation8 + $0x188] sm:$0xff] %v1996_v17  ;;  %v927_v25 = vpop.f32.mrb[35].mxu1 }
 0x181   :  { %v1397_v26 = vadd.f32 %v1396_v19, %v1334_v21 }
 0x184   :  { %v802_v27 = vpop.f32.mrb[36].mxu0  ;;  %v1999_v28 = vpop.f32.mrb[36].mxu1 }
 0x185   :  { %1198 = vst [vmem:[#allocation8 + $0x90] sm:$0xff] %v802_v27  ;;  %v1262_v29 = vadd.f32 %v1261_v20, %v802_v27  ;;  %v1335_v32 = vmul.f32 %v802_v27, %v802_v27  ;;  %v804_v33 = vpop.f32.mrb[37].mxu0  ;;  %1230 = vst [vmem:[#allocation8 + $0x190] sm:$0xff] %v1999_v28  ;;  %v932_v34 = vpop.f32.mrb[37].mxu1 }
 0x186   :  { %v805_v35 = vpop.f32.mrb[38].mxu0  ;;  %v2002_v37 = vpop.f32.mrb[38].mxu1 }
 0x187   :  { %v1398_v38 = vadd.f32 %v1397_v26, %v1335_v32  ;;  %1199 = vst [vmem:[#allocation8 + $0x98] sm:$0xff] %v805_v35  ;;  %v1263_v39 = vadd.f32 %v1262_v29, %v805_v35  ;;  %v1336_v41 = vmul.f32 %v805_v35, %v805_v35  ;;  %v807_v42 = vpop.f32.mrb[39].mxu0  ;;  %1231 = vst [vmem:[#allocation8 + $0x198] sm:$0xff] %v2002_v37  ;;  %v935_v43 = vpop.f32.mrb[39].mxu1 }
 0x189   :  { %v1399_v45 = vadd.f32 %v1398_v38, %v1336_v41 }
 0x18c   :  { %v810_v46 = vpop.f32.mrb[40].mxu0  ;;  %v2005_v48 = vpop.f32.mrb[40].mxu1 }
 0x18d   :  { %1200 = vst [vmem:[#allocation8 + $0xa0] sm:$0xff] %v810_v46  ;;  %v1264_v49 = vadd.f32 %v1263_v39, %v810_v46  ;;  %v1337_v51 = vmul.f32 %v810_v46, %v810_v46  ;;  %v812_v52 = vpop.f32.mrb[41].mxu0  ;;  %1232 = vst [vmem:[#allocation8 + $0x1a0] sm:$0xff] %v2005_v48  ;;  %v940_v53 = vpop.f32.mrb[41].mxu1 }
 0x18e   :  { %v813_v54 = vpop.f32.mrb[42].mxu0  ;;  %v2008_v55 = vpop.f32.mrb[42].mxu1 }
 0x18f   :  { %v1400_v57 = vadd.f32 %v1399_v45, %v1337_v51  ;;  %1201 = vst [vmem:[#allocation8 + $0xa8] sm:$0xff] %v813_v54  ;;  %v1265_v59 = vadd.f32 %v1264_v49, %v813_v54  ;;  %v1338_v60 = vmul.f32 %v813_v54, %v813_v54  ;;  %v815_v61 = vpop.f32.mrb[43].mxu0  ;;  %1233 = vst [vmem:[#allocation8 + $0x1a8] sm:$0xff] %v2008_v55  ;;  %v943_v62 = vpop.f32.mrb[43].mxu1 }
 0x191   :  { %v1401_v1 = vadd.f32 %v1400_v57, %v1338_v60 }
 0x194   :  { %v818_v2 = vpop.f32.mrb[44].mxu0  ;;  %v2011_v3 = vpop.f32.mrb[44].mxu1 }
 0x195   :  { %1202 = vst [vmem:[#allocation8 + $0xb0] sm:$0xff] %v818_v2  ;;  %v1266_v4 = vadd.f32 %v1265_v59, %v818_v2  ;;  %v1339_v5 = vmul.f32 %v818_v2, %v818_v2  ;;  %v820_v6 = vpop.f32.mrb[45].mxu0  ;;  %1234 = vst [vmem:[#allocation8 + $0x1b0] sm:$0xff] %v2011_v3  ;;  %v948_v7 = vpop.f32.mrb[45].mxu1 }
 0x196   :  { %v821_v10 = vpop.f32.mrb[46].mxu0  ;;  %v2014_v11 = vpop.f32.mrb[46].mxu1 }
 0x197   :  { %v1402_v12 = vadd.f32 %v1401_v1, %v1339_v5  ;;  %1203 = vst [vmem:[#allocation8 + $0xb8] sm:$0xff] %v821_v10  ;;  %v1267_v13 = vadd.f32 %v1266_v4, %v821_v10  ;;  %v1340_v15 = vmul.f32 %v821_v10, %v821_v10  ;;  %v823_v16 = vpop.f32.mrb[47].mxu0  ;;  %1235 = vst [vmem:[#allocation8 + $0x1b8] sm:$0xff] %v2014_v11  ;;  %v951_v19 = vpop.f32.mrb[47].mxu1 }
 0x199   :  { %v1403_v20 = vadd.f32 %v1402_v12, %v1340_v15 }
 0x19c   :  { %v826_v21 = vpop.f32.mrb[48].mxu0  ;;  %v2017_v23 = vpop.f32.mrb[48].mxu1 }
 0x19d   :  { %1204 = vst [vmem:[#allocation8 + $0xc0] sm:$0xff] %v826_v21  ;;  %v1268_v25 = vadd.f32 %v1267_v13, %v826_v21  ;;  %v1341_v26 = vmul.f32 %v826_v21, %v826_v21  ;;  %v828_v27 = vpop.f32.mrb[49].mxu0  ;;  %1236 = vst [vmem:[#allocation8 + $0x1c0] sm:$0xff] %v2017_v23  ;;  %v956_v29 = vpop.f32.mrb[49].mxu1 }
 0x19e   :  { %v829_v32 = vpop.f32.mrb[50].mxu0  ;;  %v2020_v33 = vpop.f32.mrb[50].mxu1 }
 0x19f   :  { %v1404_v34 = vadd.f32 %v1403_v20, %v1341_v26  ;;  %1205 = vst [vmem:[#allocation8 + $0xc8] sm:$0xff] %v829_v32  ;;  %v1269_v35 = vadd.f32 %v1268_v25, %v829_v32  ;;  %v1342_v38 = vmul.f32 %v829_v32, %v829_v32  ;;  %v831_v39 = vpop.f32.mrb[51].mxu0  ;;  %1237 = vst [vmem:[#allocation8 + $0x1c8] sm:$0xff] %v2020_v33  ;;  %v959_v41 = vpop.f32.mrb[51].mxu1 }
 0x1a1   :  { %v1405_v42 = vadd.f32 %v1404_v34, %v1342_v38 }
 0x1a4   :  { %v834_v43 = vpop.f32.mrb[52].mxu0  ;;  %v2023_v45 = vpop.f32.mrb[52].mxu1 }
 0x1a5   :  { %1206 = vst [vmem:[#allocation8 + $0xd0] sm:$0xff] %v834_v43  ;;  %v1270_v46 = vadd.f32 %v1269_v35, %v834_v43  ;;  %v1343_v49 = vmul.f32 %v834_v43, %v834_v43  ;;  %v836_v51 = vpop.f32.mrb[53].mxu0  ;;  %1238 = vst [vmem:[#allocation8 + $0x1d0] sm:$0xff] %v2023_v45  ;;  %v964_v52 = vpop.f32.mrb[53].mxu1 }
 0x1a6   :  { %v837_v53 = vpop.f32.mrb[54].mxu0  ;;  %v2026_v54 = vpop.f32.mrb[54].mxu1 }
 0x1a7   :  { %v1406_v57 = vadd.f32 %v1405_v42, %v1343_v49  ;;  %1207 = vst [vmem:[#allocation8 + $0xd8] sm:$0xff] %v837_v53  ;;  %v1271_v59 = vadd.f32 %v1270_v46, %v837_v53  ;;  %v1344_v60 = vmul.f32 %v837_v53, %v837_v53  ;;  %v839_v61 = vpop.f32.mrb[55].mxu0  ;;  %1239 = vst [vmem:[#allocation8 + $0x1d8] sm:$0xff] %v2026_v54  ;;  %v967_v62 = vpop.f32.mrb[55].mxu1 }
 0x1a9   :  { %v1407_v1 = vadd.f32 %v1406_v57, %v1344_v60 }
 0x1ac   :  { %v842_v2 = vpop.f32.mrb[56].mxu0  ;;  %v2029_v4 = vpop.f32.mrb[56].mxu1 }
 0x1ad   :  { %1208 = vst [vmem:[#allocation8 + $0xe0] sm:$0xff] %v842_v2  ;;  %v1272_v5 = vadd.f32 %v1271_v59, %v842_v2  ;;  %v1345_v6 = vmul.f32 %v842_v2, %v842_v2  ;;  %v844_v7 = vpop.f32.mrb[57].mxu0  ;;  %1240 = vst [vmem:[#allocation8 + $0x1e0] sm:$0xff] %v2029_v4  ;;  %v972_v10 = vpop.f32.mrb[57].mxu1 }
 0x1ae   :  { %v845_v12 = vpop.f32.mrb[58].mxu0  ;;  %v2032_v13 = vpop.f32.mrb[58].mxu1 }
 0x1af   :  { %v1408_v15 = vadd.f32 %v1407_v1, %v1345_v6  ;;  %1209 = vst [vmem:[#allocation8 + $0xe8] sm:$0xff] %v845_v12  ;;  %v1273_v16 = vadd.f32 %v1272_v5, %v845_v12  ;;  %v1346_v19 = vmul.f32 %v845_v12, %v845_v12  ;;  %v847_v20 = vpop.f32.mrb[59].mxu0  ;;  %1241 = vst [vmem:[#allocation8 + $0x1e8] sm:$0xff] %v2032_v13  ;;  %v975_v21 = vpop.f32.mrb[59].mxu1 }
 0x1b1   :  { %v1409_v25 = vadd.f32 %v1408_v15, %v1346_v19 }
 0x1b4   :  { %v850_v26 = vpop.f32.mrb[60].mxu0  ;;  %v2035_v27 = vpop.f32.mrb[60].mxu1 }
 0x1b5   :  { %1210 = vst [vmem:[#allocation8 + $0xf0] sm:$0xff] %v850_v26  ;;  %v1274_v29 = vadd.f32 %v1273_v16, %v850_v26  ;;  %v1347_v32 = vmul.f32 %v850_v26, %v850_v26  ;;  %v852_v34 = vpop.f32.mrb[61].mxu0  ;;  %1242 = vst [vmem:[#allocation8 + $0x1f0] sm:$0xff] %v2035_v27  ;;  %v980_v35 = vpop.f32.mrb[61].mxu1 }
 0x1b6   :  { %v853_v38 = vpop.f32.mrb[62].mxu0  ;;  %v2038_v39 = vpop.f32.mrb[62].mxu1 }
 0x1b7   :  { %v1410_v41 = vadd.f32 %v1409_v25, %v1347_v32  ;;  %1211 = vst [vmem:[#allocation8 + $0xf8] sm:$0xff] %v853_v38  ;;  %v1275_v42 = vadd.f32 %v1274_v29, %v853_v38  ;;  %v1348_v43 = vmul.f32 %v853_v38, %v853_v38  ;;  %v855_v46 = vpop.f32.mrb[63].mxu0  ;;  %1243 = vst [vmem:[#allocation8 + $0x1f8] sm:$0xff] %v2038_v39  ;;  %v983_v49 = vpop.f32.mrb[63].mxu1 }
 0x1b8   :  { %1787 = shalt.err (!%p1784_p6)
}
 0x1b9   :  { %s1788_s20 = scalar_lea.hbm %s2186_s2, 8192 }
 0x1ba   :  { %p1789_p7 = scmp.ne.s32.totalorder %s2186_s2, %s1788_s20  ;;  %p1792_p8 = scmp.lt.u32.totalorder %s1788_s20, %s2186_s2 }
 0x1bc   :  { %p1794_p9 = pnand %p1792_p8, %p1789_p7 }
 0x1be   :  { %1797 = shalt.err (!%p1794_p9)
}
 0x1bf   :  { %1463 = dma.vmem_to_hbm [thread:$0]  %s1458_s16, 8192, %s2186_s2, [#allocation5], %s1851_s25, %s1851_s25, %s1852_s26   ;;  %v1349_v51 = vmul.f32 %v1945_v18, %v1945_v18  ;;  %v1276_v52 = vadd.f32 %v1275_v42, %v1945_v18  ;;  %v1411_v53 = vadd.f32 %v1410_v41, %v1348_v43  ;;  %v1350_v57 = vmul.f32 %v1948_v22, %v1948_v22 }
 0x1c0   :  { %v1351_v61 = vmul.f32 %v1951_v30, %v1951_v30  ;;  %v1352_v2 = vmul.f32 %v1954_v36, %v1954_v36  ;;  %v1353_v18 = vmul.f32 %v1957_v44, %v1957_v44  ;;  %s1859_s2 = smov [#allocation9]   ;;  %s1860_s26 = smov [#allocation11]  }
 0x1c1   :  { %v1277_v59 = vadd.f32 %v1276_v52, %v1948_v22  ;;  %v1412_v60 = vadd.f32 %v1411_v53, %v1349_v51  ;;  %v1354_v22 = vmul.f32 %v1960_v50, %v1960_v50  ;;  %s1470_s25 = sshll.u32 %s1859_s2, 4  ;;  %s1480_s29 = sshll.u32 %s1860_s26, 4  ;;  %s1471_s25 = int_to_ptr.vmem [resolvable:$true] %s1470_s25  ;;  %s2152_s29 = int_to_ptr.vmem [resolvable:$true] %s1480_s29 }
 0x1c2   :  { %s1798_s30 = scalar_lea.vmem %s1471_s25, 16  ;;  %s1802_s5 = scalar_lea.vmem %s1471_s25, 32 }
 0x1c3   :  { %v1278_v62 = vadd.f32 %v1277_v59, %v1951_v30  ;;  %v1413_v1 = vadd.f32 %v1412_v60, %v1350_v57  ;;  %v1355_v30 = vmul.f32 %v1963_v58, %v1963_v58  ;;  %v1365_v59 = vmul.f32 %v1993_v9, %v1993_v9  ;;  %p1799_p10 = scmp.ne.s32.totalorder %s1471_s25, %s1798_s30  ;;  %p1803_p11 = scmp.lt.s32.totalorder %s1471_s25, %s1471_s25 }
 0x1c4   :  { %p1804_p12 = scmp.lt.s32.totalorder %s1802_s5, %s1798_s30 }
 0x1c5   :  { %v1279_v5 = vadd.f32 %v1278_v62, %v1954_v36  ;;  %v1414_v6 = vadd.f32 %v1413_v1, %v1351_v61  ;;  %v1356_v36 = vmul.f32 %v1966_v0, %v1966_v0  ;;  %v1366_v62 = vmul.f32 %v1996_v17, %v1996_v17 }
 0x1c6   :  { %p1805_p13 = por %p1804_p12, %p1803_p11 }
 0x1c7   :  { %v1280_v7 = vadd.f32 %v1279_v5, %v1957_v44  ;;  %v1415_v10 = vadd.f32 %v1414_v6, %v1352_v2  ;;  %v1357_v44 = vmul.f32 %v1969_v8, %v1969_v8  ;;  %v1367_v2 = vmul.f32 %v1999_v28, %v1999_v28 }
 0x1c8   :  { %v1368_v6 = vmul.f32 %v2002_v37, %v2002_v37  ;;  %p1806_p0 = pnand %p1805_p13, %p1799_p10 }
 0x1c9   :  { %v1281_v12 = vadd.f32 %v1280_v7, %v1960_v50  ;;  %v1416_v15 = vadd.f32 %v1415_v10, %v1353_v18  ;;  %v1358_v50 = vmul.f32 %v1972_v14, %v1972_v14  ;;  %v1369_v7 = vmul.f32 %v2005_v48, %v2005_v48 }
 0x1cb   :  { %v1282_v16 = vadd.f32 %v1281_v12, %v1963_v58  ;;  %v1417_v19 = vadd.f32 %v1416_v15, %v1354_v22  ;;  %v1359_v58 = vmul.f32 %v1975_v24, %v1975_v24  ;;  %v1370_v22 = vmul.f32 %v2008_v55, %v2008_v55 }
 0x1cc   :  { %v1371_v15 = vmul.f32 %v2011_v3, %v2011_v3 }
 0x1cd   :  { %v1283_v20 = vadd.f32 %v1282_v16, %v1966_v0  ;;  %v1418_v21 = vadd.f32 %v1417_v19, %v1355_v30  ;;  %v1360_v0 = vmul.f32 %v1978_v31, %v1978_v31  ;;  %v1372_v16 = vmul.f32 %v2014_v11, %v2014_v11 }
 0x1cf   :  { %v1419_v25 = vadd.f32 %v1418_v21, %v1356_v36  ;;  %v1284_v26 = vadd.f32 %v1283_v20, %v1969_v8  ;;  %v1361_v8 = vmul.f32 %v1981_v40, %v1981_v40  ;;  %v1373_v36 = vmul.f32 %v2017_v23, %v2017_v23 }
 0x1d0   :  { %v1374_v21 = vmul.f32 %v2020_v33, %v2020_v33 }
 0x1d1   :  { %v1285_v29 = vadd.f32 %v1284_v26, %v1972_v14  ;;  %v1420_v32 = vadd.f32 %v1419_v25, %v1357_v44  ;;  %v1362_v14 = vmul.f32 %v1984_v47, %v1984_v47  ;;  %v1375_v25 = vmul.f32 %v2023_v45, %v2023_v45 }
 0x1d3   :  { %v1286_v34 = vadd.f32 %v1285_v29, %v1975_v24  ;;  %v1421_v35 = vadd.f32 %v1420_v32, %v1358_v50  ;;  %v1363_v24 = vmul.f32 %v1987_v56, %v1987_v56  ;;  %v1376_v50 = vmul.f32 %v2026_v54, %v2026_v54 }
 0x1d4   :  { %v1377_v32 = vmul.f32 %v2029_v4, %v2029_v4 }
 0x1d5   :  { %v1287_v38 = vadd.f32 %v1286_v34, %v1978_v31  ;;  %v1422_v41 = vadd.f32 %v1421_v35, %v1359_v58  ;;  %v1364_v31 = vmul.f32 %v1990_v63, %v1990_v63  ;;  %v1378_v34 = vmul.f32 %v2032_v13, %v2032_v13 }
 0x1d7   :  { %v1288_v42 = vadd.f32 %v1287_v38, %v1981_v40  ;;  %v1423_v43 = vadd.f32 %v1422_v41, %v1360_v0  ;;  %v1380_v41 = vmul.f32 %v2038_v39, %v2038_v39 }
 0x1d9   :  { %v1289_v46 = vadd.f32 %v1288_v42, %v1984_v47  ;;  %v1424_v49 = vadd.f32 %v1423_v43, %v1361_v8 }
 0x1db   :  { %v1290_v51 = vadd.f32 %v1289_v46, %v1987_v56  ;;  %v1425_v52 = vadd.f32 %v1424_v49, %v1362_v14 }
 0x1dd   :  { %v1291_v53 = vadd.f32 %v1290_v51, %v1990_v63  ;;  %v1426_v57 = vadd.f32 %v1425_v52, %v1363_v24  ;;  %v1244_v52 = vld [vmem:[#allocation9] sm:$0x1] }
 0x1df   :  { %v1292_v40 = vadd.f32 %v1291_v53, %v1993_v9  ;;  %v1427_v60 = vadd.f32 %v1426_v57, %v1364_v31  ;;  %v1316_v53 = vld [vmem:[#allocation11] sm:$0x1] }
 0x1e1   :  { %v1428_v47 = vadd.f32 %v1427_v60, %v1365_v59  ;;  %v1293_v61 = vadd.f32 %v1292_v40, %v1996_v17 }
 0x1e3   :  { %v1429_v56 = vadd.f32 %v1428_v47, %v1366_v62  ;;  %v1294_v1 = vadd.f32 %v1293_v61, %v1999_v28 }
 0x1e5   :  { %v1430_v63 = vadd.f32 %v1429_v56, %v1367_v2  ;;  %v1295_v5 = vadd.f32 %v1294_v1, %v2002_v37 }
 0x1e7   :  { %v1431_v9 = vadd.f32 %v1430_v63, %v1368_v6  ;;  %v1296_v18 = vadd.f32 %v1295_v5, %v2005_v48 }
 0x1e9   :  { %v1432_v10 = vadd.f32 %v1431_v9, %v1369_v7  ;;  %v1297_v17 = vadd.f32 %v1296_v18, %v2008_v55 }
 0x1eb   :  { %v1433_v12 = vadd.f32 %v1432_v10, %v1370_v22  ;;  %v1298_v28 = vadd.f32 %v1297_v17, %v2011_v3 }
 0x1ed   :  { %v1434_v30 = vadd.f32 %v1433_v12, %v1371_v15  ;;  %v1299_v37 = vadd.f32 %v1298_v28, %v2014_v11 }
 0x1ef   :  { %v1435_v19 = vadd.f32 %v1434_v30, %v1372_v16  ;;  %v1300_v48 = vadd.f32 %v1299_v37, %v2017_v23 }
 0x1f1   :  { %v1436_v20 = vadd.f32 %v1435_v19, %v1373_v36  ;;  %v1301_v55 = vadd.f32 %v1300_v48, %v2020_v33 }
 0x1f3   :  { %v1437_v44 = vadd.f32 %v1436_v20, %v1374_v21  ;;  %v1302_v3 = vadd.f32 %v1301_v55, %v2023_v45  ;;  %v1379_v45 = vmul.f32 %v2035_v27, %v2035_v27 }
 0x1f5   :  { %v1438_v26 = vadd.f32 %v1437_v44, %v1375_v25  ;;  %v1303_v11 = vadd.f32 %v1302_v3, %v2026_v54 }
 0x1f7   :  { %v1439_v29 = vadd.f32 %v1438_v26, %v1376_v50  ;;  %v1304_v23 = vadd.f32 %v1303_v11, %v2029_v4 }
 0x1f9   :  { %v1440_v58 = vadd.f32 %v1439_v29, %v1377_v32  ;;  %v1305_v33 = vadd.f32 %v1304_v23, %v2032_v13 }
 0x1fb   :  { %v1441_v35 = vadd.f32 %v1440_v58, %v1378_v34  ;;  %v1306_v0 = vadd.f32 %v1305_v33, %v2035_v27 }
 0x1fd   :  { %v1442_v38 = vadd.f32 %v1441_v35, %v1379_v45  ;;  %v1307_v54 = vadd.f32 %v1306_v0, %v2038_v39 }
 0x1ff   :  { %v1308_v8 = vrot.slane %v1307_v54, 4  ;;  %v1443_v4 = vadd.f32 %v1442_v38, %v1380_v41 }
 0x201   :  { %v1309_v42 = vadd.f32 %v1308_v8, %v1307_v54  ;;  %v1444_v43 = vrot.slane %v1443_v4, 4 }
 0x203   :  { %v1310_v14 = vrot.slane %v1309_v42, 2  ;;  %v1445_v46 = vadd.f32 %v1444_v43, %v1443_v4 }
 0x205   :  { %v1311_v49 = vadd.f32 %v1310_v14, %v1309_v42  ;;  %v1446_v13 = vrot.slane %v1445_v46, 2 }
 0x207   :  { %v1312_v24 = vrot.slane %v1311_v49, 1  ;;  %v1447_v51 = vadd.f32 %v1446_v13, %v1445_v46 }
 0x209   :  { %v1448_v27 = vrot.slane %v1447_v51, 1  ;;  %v1313_v31 = vadd.f32 %v1312_v24, %v1311_v49 }
 0x20b   :  { %v1314_v57 = vadd.f32 %v1313_v31, %v1244_v52  ;;  %v1449_v39 = vadd.f32 %v1448_v27, %v1447_v51 }
 0x20d   :  { %1315 = vst [vmem:[#allocation9] sm:$0x1] %v1314_v57  ;;  %v1450_v40 = vadd.f32 %v1449_v39, %v1316_v53 }
 0x20e   :  { %1809 = shalt.err (!%p1806_p0)
}
 0x20f   :  { %s1810_s8 = scalar_lea.hbm %s2187_s3, 16 }
 0x210   :  { %p1811_p1 = scmp.ne.s32.totalorder %s2187_s3, %s1810_s8  ;;  %p1814_p2 = scmp.lt.u32.totalorder %s1810_s8, %s2187_s3 }
 0x212   :  { %p1816_p3 = pnand %p1814_p2, %p1811_p1 }
 0x214   :  { %1819 = shalt.err (!%p1816_p3)
}
 0x215   :  { %1473 = dma.vmem_to_hbm [thread:$0]  %s1471_s25, 16, %s2187_s3, [#allocation10]   ;;  %1451 = vst [vmem:[#allocation11] sm:$0x1] %v1450_v40 }
 0x216   :  { %s1820_s14 = scalar_lea.vmem %s2152_s29, 16  ;;  %s1824_s15 = scalar_lea.vmem %s2152_s29, 32 }
 0x217   :  { %p1821_p4 = scmp.ne.s32.totalorder %s2152_s29, %s1820_s14  ;;  %p1825_p5 = scmp.lt.s32.totalorder %s2152_s29, %s2152_s29 }
 0x218   :  { %p1826_p6 = scmp.lt.s32.totalorder %s1824_s15, %s1820_s14 }
 0x21a   :  { %p1827_p7 = por %p1826_p6, %p1825_p5 }
 0x21c   :  { %p1828_p8 = pnand %p1827_p7, %p1821_p4 }
 0x21e   :  { %1831 = shalt.err (!%p1828_p8)
}
 0x21f   :  { %s1832_s17 = scalar_lea.hbm %s2188_s4, 16 }
 0x220   :  { %p1833_p9 = scmp.ne.s32.totalorder %s2188_s4, %s1832_s17  ;;  %p1836_p10 = scmp.lt.u32.totalorder %s1832_s17, %s2188_s4 }
 0x222   :  { %p1838_p11 = pnand %p1836_p10, %p1833_p9 }
 0x224   :  { %1841 = shalt.err (!%p1838_p11)
}
 0x225   :  { %1483 = dma.vmem_to_hbm [thread:$0]  %s2152_s29, 16, %s2188_s4, [#allocation10]  }
 0x226   :  { %1846 = dma.done.wait [#allocation5], 8192  }
 0x227   :  { %1847 = vsyncadd [#allocation5], 4294959104 }
 0x228   :  { %1848 = dma.done.wait [#allocation10], 32  }
 0x229   :  { %1849 = vsyncadd [#allocation10], 4294967264 }
 0x22a   :  { %1493 = vsyncpa [#allocation4], 1 }
 0x22b   :  { %1494 = vsyncpa [#allocation7], 1 }
 0x22c   :  { %1495 = vsyncpa [#allocation5], 1 }
 0x22d   :  { %1496 = vsyncpa [#allocation10], 1 }

</bundles_post_ra>
